<compile_context>
chip_gen: v7x
topology: tpu7x:2x2x1
jax: 0.10.0
libtpu: 0.0.40
codegen_flags: <defaults>
</compile_context>

<pallas_src>
import functools

import jax
import jax.numpy as jnp
from jax.experimental import pallas as pl
from jax.experimental.pallas import tpu as pltpu

STATE_DIM = 8      # env.observation_space.shape[0] (e.g. LunarLander)
HIDDEN = 64
N_ACTIONS = 5


def _actor_kernel(x_ref, w1_ref, b1_ref, w2_ref, b2_ref, w3_ref, b3_ref, o_ref):
    # x_ref: (tb, STATE_DIM) f32.  Weights are bf16 (MXU-native), biases f32.
    # Dots take bf16 operands and accumulate in f32; everything elementwise
    # (bias add, tanh, softmax) stays f32.
    x = x_ref[...].astype(jnp.bfloat16)
    h1 = jnp.tanh(
        jnp.dot(x, w1_ref[...], preferred_element_type=jnp.float32) + b1_ref[...]
    )
    h2 = jnp.tanh(
        jnp.dot(h1.astype(jnp.bfloat16), w2_ref[...],
                preferred_element_type=jnp.float32) + b2_ref[...]
    )
    logits = (
        jnp.dot(h2.astype(jnp.bfloat16), w3_ref[...],
                preferred_element_type=jnp.float32) + b3_ref[...]
    )

    # Numerically-stable softmax over the 5 action logits.  Exact divide so
    # each row sums to 1 to f32 precision (A2C samples actions / takes
    # log-probs from these; the approximate reciprocal bought no speed here).
    m = jnp.max(logits, axis=-1, keepdims=True)
    e = jnp.exp(logits - m)
    s = jnp.sum(e, axis=-1, keepdims=True)
    probs = e / s                                   # (tb, 5) f32

    # Lane-dense writeback: store transposed as (5, tb) so the output is full
    # 128-lane stores + a dense VMEM->HBM block, not per-row masked stores.
    # The transpose rides the (idle) XLU slot.
    o_ref[...] = probs.T


def _pick_tiling(b, tb):
    """Choose (b_pad, tb_eff) with tb_eff dividing b_pad and b_pad >= b.

    Prefers tilings that need no wrapper-side jnp.pad / output slice (each is
    an extra HBM round-trip).  Lane-dense (N_ACTIONS, tb_eff) output blocks
    need tb_eff % 128 == 0 unless tb_eff == b_pad (full extent).  For large
    batches it tries to produce >= 2 grid steps so the "parallel" batch axis
    can shard across both TensorCores on v7x.
    """
    if b >= 256:
        hi = (min(tb, b // 2) // 128) * 128
        for cand in range(hi, 127, -128):
            if b % cand == 0:
                return b, cand                  # no padding, >= 2 tiles
    if b <= tb:
        return b, b                             # single full-extent block, no padding
    # Cold path: no suitable divisor -> pad batch up to a multiple of tb.
    # (A separate small tail pallas_call would avoid this pad copy.)
    b_pad = ((b + tb - 1) // tb) * tb
    return b_pad, tb


@functools.partial(jax.jit, static_argnames=("tb",))
def actor_forward_batch(x, w1, b1, w2, b2, w3, b3, *, tb=1024):
    """x: (B, state_dim) -> (B, 5) float32 action probabilities."""
    x = x.astype(jnp.float32)
    b = x.shape[0]
    b_pad, tb_eff = _pick_tiling(b, tb)
    if b_pad != b:
        x = jnp.pad(x, ((0, b_pad - b), (0, 0)))   # cold path only
    n_tiles = b_pad // tb_eff

    # bf16 weights so the VMEM-resident copies (constant index_maps below)
    # are half-size and MXU-native; biases stay f32.
    w1b = w1.astype(jnp.bfloat16)
    w2b = w2.astype(jnp.bfloat16)
    w3b = w3.astype(jnp.bfloat16)

    const = lambda i: (0, 0)    # weights/biases: same block every step -> resident
    out_t = pl.pallas_call(
        _actor_kernel,
        out_shape=jax.ShapeDtypeStruct((N_ACTIONS, b_pad), jnp.float32),
        grid=(n_tiles,),
        in_specs=[
            # NOTE: on v5e, if the input DMA is still exposed at large tb, add
            # pipeline_mode=pl.Buffered(3) to this x BlockSpec.
            pl.BlockSpec((tb_eff, STATE_DIM), lambda i: (i, 0)),
            pl.BlockSpec((STATE_DIM, HIDDEN), const),
            pl.BlockSpec((1, HIDDEN), const),
            pl.BlockSpec((HIDDEN, HIDDEN), const),
            pl.BlockSpec((1, HIDDEN), const),
            pl.BlockSpec((HIDDEN, N_ACTIONS), const),
            pl.BlockSpec((1, N_ACTIONS), const),
        ],
        out_specs=pl.BlockSpec((N_ACTIONS, tb_eff), lambda i: (0, i)),
        compiler_params=pltpu.CompilerParams(
            dimension_semantics=("parallel",),   # shards batch tiles across TCs (v7x)
        ),
    )(x, w1b, b1, w2b, b2, w3b, b3)

    probs = out_t.T                              # (b_pad, 5): tiny layout plumbing
    return probs if b_pad == b else probs[:b]


def actor_forward(x, w1, b1, w2, b2, w3, b3):
    """Single state (state_dim,) -> (5,) probabilities (original PyTorch usage)."""
    return actor_forward_batch(x.reshape(1, -1), w1, b1, w2, b2, w3, b3)[0]


def init_actor_params(key, state_dim=STATE_DIM, hidden=HIDDEN, n_actions=N_ACTIONS):
    """Deterministic PyTorch-style Linear init: U(-1/sqrt(fan_in), 1/sqrt(fan_in))."""
    ks = jax.random.split(key, 6)

    def linear(kw, kb, fan_in, fan_out):
        bound = 1.0 / jnp.sqrt(jnp.float32(fan_in))
        w = jax.random.uniform(kw, (fan_in, fan_out), jnp.float32, -bound, bound)
        b = jax.random.uniform(kb, (1, fan_out), jnp.float32, -bound, bound)
        return w, b

    w1, b1 = linear(ks[0], ks[1], state_dim, hidden)
    w2, b2 = linear(ks[2], ks[3], hidden, hidden)
    w3, b3 = linear(ks[4], ks[5], hidden, n_actions)
    return w1, b1, w2, b2, w3, b3


def _reference_forward_batch(x, w1, b1, w2, b2, w3, b3):
    h1 = jnp.tanh(x @ w1 + b1)
    h2 = jnp.tanh(h1 @ w2 + b2)
    return jax.nn.softmax(h2 @ w3 + b3, axis=-1)


def _reference_forward_batch_bf16(x, w1, b1, w2, b2, w3, b3):
    """Reference mirroring the kernel's bf16 matmul inputs / f32 accumulation."""
    bf = jnp.bfloat16
    h1 = jnp.tanh(jnp.dot(x.astype(bf), w1.astype(bf),
                          preferred_element_type=jnp.float32) + b1)
    h2 = jnp.tanh(jnp.dot(h1.astype(bf), w2.astype(bf),
                          preferred_element_type=jnp.float32) + b2)
    logits = jnp.dot(h2.astype(bf), w3.astype(bf),
                     preferred_element_type=jnp.float32) + b3
    return jax.nn.softmax(logits, axis=-1)


if __name__ == "__main__":
    key = jax.random.PRNGKey(0)
    k_params, k_x = jax.random.split(key)
    params = init_actor_params(k_params)

    # Small batched example: 256 states, tb=128 -> 2 lane-dense grid steps
    # (no padding, no output slice; both TCs active on v7x).
    B = 256
    xb = jax.random.normal(k_x, (B, STATE_DIM), jnp.float32)

    probs = jax.block_until_ready(actor_forward_batch(xb, *params, tb=128))
    assert probs.shape == (B, N_ACTIONS)

    # Exact softmax divide -> rows sum to 1 to f32 precision.
    assert jnp.allclose(jnp.sum(probs, axis=-1), 1.0, atol=1e-5)

    # Tight match against a reference with the same bf16 matmul inputs ...
    ref_bf16 = _reference_forward_batch_bf16(xb, *params)
    assert jnp.allclose(probs, ref_bf16, atol=2e-3, rtol=2e-3)
    # ... and within bf16-matmul tolerance of the pure-f32 reference.
    ref_f32 = _reference_forward_batch(xb, *params)
    assert jnp.allclose(probs, ref_f32, atol=2e-2, rtol=2e-2)

    # Single-state path (matches the original PyTorch 1-D usage).
    p1 = jax.block_until_ready(actor_forward(xb[0], *params))
    assert p1.shape == (N_ACTIONS,)
    assert jnp.allclose(p1, ref_bf16[0], atol=2e-3, rtol=2e-3)

    print("KERNEL_OK")
</pallas_src>

<mosaic_0001>
module attributes {stable_mosaic.version = 11 : i64} {
  func.func @_actor_kernel(%arg0: i32, %arg1: memref<128x8xf32, #tpu.memory_space<vmem>>, %arg2: memref<8x64xbf16, #tpu.memory_space<vmem>>, %arg3: memref<1x64xf32, #tpu.memory_space<vmem>>, %arg4: memref<64x64xbf16, #tpu.memory_space<vmem>>, %arg5: memref<1x64xf32, #tpu.memory_space<vmem>>, %arg6: memref<64x5xbf16, #tpu.memory_space<vmem>>, %arg7: memref<1x5xf32, #tpu.memory_space<vmem>>, %arg8: memref<5x128xf32, #tpu.memory_space<vmem>>) attributes {dimension_semantics = [#tpu.dimension_semantics<parallel>], iteration_bounds = array<i64: 2>, scalar_prefetch = 0 : i64, scratch_operands = 0 : i64, tpu.core_type = #tpu.core_type<tc>, window_params = [{transform_indices = @transform_0, window_bounds = array<i64: 128, 8>}, {pipeline_mode = #tpu.pipeline_mode<synchronous>, transform_indices = @transform_1, window_bounds = array<i64: 8, 64>}, {pipeline_mode = #tpu.pipeline_mode<synchronous>, transform_indices = @transform_2, window_bounds = array<i64: 1, 64>}, {pipeline_mode = #tpu.pipeline_mode<synchronous>, transform_indices = @transform_3, window_bounds = array<i64: 64, 64>}, {pipeline_mode = #tpu.pipeline_mode<synchronous>, transform_indices = @transform_4, window_bounds = array<i64: 1, 64>}, {pipeline_mode = #tpu.pipeline_mode<synchronous>, transform_indices = @transform_5, window_bounds = array<i64: 64, 5>}, {pipeline_mode = #tpu.pipeline_mode<synchronous>, transform_indices = @transform_6, window_bounds = array<i64: 1, 5>}, {transform_indices = @transform_7, window_bounds = array<i64: 5, 128>}]} {
    %c0 = arith.constant 0 : index
    %c0_0 = arith.constant 0 : index
    %0 = vector.load %arg1[%c0, %c0_0] : memref<128x8xf32, #tpu.memory_space<vmem>>, vector<128x8xf32>
    %1 = arith.truncf %0 : vector<128x8xf32> to vector<128x8xbf16>
    %c0_1 = arith.constant 0 : index
    %c0_2 = arith.constant 0 : index
    %2 = vector.load %arg2[%c0_1, %c0_2] : memref<8x64xbf16, #tpu.memory_space<vmem>>, vector<8x64xbf16>
    %cst = arith.constant dense<0.000000e+00> : vector<128x64xf32>
    %3 = tpu.matmul %1, %2, %cst {dimension_numbers = #tpu.dot_dimension_numbers<[1], [0], [0], [1], [0, 0, 1, 1], [], []>} : vector<128x8xbf16>, vector<8x64xbf16>, vector<128x64xf32> -> vector<128x64xf32>
    %c0_3 = arith.constant 0 : index
    %c0_4 = arith.constant 0 : index
    %4 = vector.load %arg3[%c0_3, %c0_4] : memref<1x64xf32, #tpu.memory_space<vmem>>, vector<1x64xf32>
    %5 = vector.broadcast %4 : vector<1x64xf32> to vector<128x64xf32>
    %6 = arith.addf %3, %5 : vector<128x64xf32>
    %7 = math.tanh %6 : vector<128x64xf32>
    %8 = arith.truncf %7 : vector<128x64xf32> to vector<128x64xbf16>
    %c0_5 = arith.constant 0 : index
    %c0_6 = arith.constant 0 : index
    %9 = vector.load %arg4[%c0_5, %c0_6] : memref<64x64xbf16, #tpu.memory_space<vmem>>, vector<64x64xbf16>
    %cst_7 = arith.constant dense<0.000000e+00> : vector<128x64xf32>
    %10 = tpu.matmul %8, %9, %cst_7 {dimension_numbers = #tpu.dot_dimension_numbers<[1], [0], [0], [1], [0, 0, 1, 1], [], []>} : vector<128x64xbf16>, vector<64x64xbf16>, vector<128x64xf32> -> vector<128x64xf32>
    %c0_8 = arith.constant 0 : index
    %c0_9 = arith.constant 0 : index
    %11 = vector.load %arg5[%c0_8, %c0_9] : memref<1x64xf32, #tpu.memory_space<vmem>>, vector<1x64xf32>
    %12 = vector.broadcast %11 : vector<1x64xf32> to vector<128x64xf32>
    %13 = arith.addf %10, %12 : vector<128x64xf32>
    %14 = math.tanh %13 : vector<128x64xf32>
    %15 = arith.truncf %14 : vector<128x64xf32> to vector<128x64xbf16>
    %c0_10 = arith.constant 0 : index
    %c0_11 = arith.constant 0 : index
    %16 = vector.load %arg6[%c0_10, %c0_11] : memref<64x5xbf16, #tpu.memory_space<vmem>>, vector<64x5xbf16>
    %cst_12 = arith.constant dense<0.000000e+00> : vector<128x5xf32>
    %17 = tpu.matmul %15, %16, %cst_12 {dimension_numbers = #tpu.dot_dimension_numbers<[1], [0], [0], [1], [0, 0, 1, 1], [], []>} : vector<128x64xbf16>, vector<64x5xbf16>, vector<128x5xf32> -> vector<128x5xf32>
    %c0_13 = arith.constant 0 : index
    %c0_14 = arith.constant 0 : index
    %18 = vector.load %arg7[%c0_13, %c0_14] : memref<1x5xf32, #tpu.memory_space<vmem>>, vector<1x5xf32>
    %19 = vector.broadcast %18 : vector<1x5xf32> to vector<128x5xf32>
    %20 = arith.addf %17, %19 : vector<128x5xf32>
    %cst_15 = arith.constant dense<0xFF800000> : vector<128xf32>
    %21 = vector.multi_reduction <maximumf>, %20, %cst_15 [1] : vector<128x5xf32> to vector<128xf32>
    %22 = vector.shape_cast %21 : vector<128xf32> to vector<128x1xf32>
    %23 = vector.broadcast %22 : vector<128x1xf32> to vector<128x5xf32>
    %24 = arith.subf %20, %23 : vector<128x5xf32>
    %25 = math.exp %24 : vector<128x5xf32>
    %cst_16 = arith.constant dense<0.000000e+00> : vector<128xf32>
    %26 = vector.multi_reduction <add>, %25, %cst_16 [1] : vector<128x5xf32> to vector<128xf32>
    %27 = vector.shape_cast %26 : vector<128xf32> to vector<128x1xf32>
    %28 = vector.broadcast %27 : vector<128x1xf32> to vector<128x5xf32>
    %29 = arith.divf %25, %28 : vector<128x5xf32>
    %30 = tpu.transpose %29, [1, 0] : vector<128x5xf32> -> vector<5x128xf32>
    %c0_17 = arith.constant 0 : index
    %c0_18 = arith.constant 0 : index
    %31 = vector.load %arg8[%c0_17, %c0_18] : memref<5x128xf32, #tpu.memory_space<vmem>>, vector<5x128xf32>
    tpu.vector_store %arg8[%c0_17, %c0_18], %30 {strides = array<i32>} : memref<5x128xf32, #tpu.memory_space<vmem>>, vector<5x128xf32>,
    return
  }
  func.func @transform_0(%arg0: i32) -> (i32, i32) {
    %c0_i32 = arith.constant 0 : i32
    %c0_i32_0 = arith.constant 0 : i32
    return %arg0, %c0_i32 : i32, i32
  }
  func.func @transform_1(%arg0: i32) -> (i32, i32) {
    %c0_i32 = arith.constant 0 : i32
    %c0_i32_0 = arith.constant 0 : i32
    %c0_i32_1 = arith.constant 0 : i32
    return %c0_i32, %c0_i32_0 : i32, i32
  }
  func.func @transform_2(%arg0: i32) -> (i32, i32) {
    %c0_i32 = arith.constant 0 : i32
    %c0_i32_0 = arith.constant 0 : i32
    %c0_i32_1 = arith.constant 0 : i32
    return %c0_i32, %c0_i32_0 : i32, i32
  }
  func.func @transform_3(%arg0: i32) -> (i32, i32) {
    %c0_i32 = arith.constant 0 : i32
    %c0_i32_0 = arith.constant 0 : i32
    %c0_i32_1 = arith.constant 0 : i32
    return %c0_i32, %c0_i32_0 : i32, i32
  }
  func.func @transform_4(%arg0: i32) -> (i32, i32) {
    %c0_i32 = arith.constant 0 : i32
    %c0_i32_0 = arith.constant 0 : i32
    %c0_i32_1 = arith.constant 0 : i32
    return %c0_i32, %c0_i32_0 : i32, i32
  }
  func.func @transform_5(%arg0: i32) -> (i32, i32) {
    %c0_i32 = arith.constant 0 : i32
    %c0_i32_0 = arith.constant 0 : i32
    %c0_i32_1 = arith.constant 0 : i32
    return %c0_i32, %c0_i32_0 : i32, i32
  }
  func.func @transform_6(%arg0: i32) -> (i32, i32) {
    %c0_i32 = arith.constant 0 : i32
    %c0_i32_0 = arith.constant 0 : i32
    %c0_i32_1 = arith.constant 0 : i32
    return %c0_i32, %c0_i32_0 : i32, i32
  }
  func.func @transform_7(%arg0: i32) -> (i32, i32) {
    %c0_i32 = arith.constant 0 : i32
    %c0_i32_0 = arith.constant 0 : i32
    return %c0_i32, %arg0 : i32, i32
  }
}

</mosaic_0001>

<bundles_post_ra>
// kernel: actor_forward_batch.1
= control target key start
LH: loop header
LB: loop body
LE: loop exit
PB: predicated region body
PF: predicated region fallthrough
CT: control target
= control target key end

     0   :  { %12 = vsyncpa [#allocation3], 0  ;;  %s1838_s0 = inlined_call_operand.vmem [shape: f32[256,8], index: 0, kind: input, shape index: {}]   ;;  %s1839_s1 = inlined_call_operand.vmem [shape: bf16[8,64], index: 1, kind: input, shape index: {}]   ;;  %s1840_s2 = inlined_call_operand.vmem [shape: f32[1,64], index: 2, kind: input, shape index: {}]   ;;  %s1841_s3 = inlined_call_operand.vmem [shape: bf16[64,64], index: 3, kind: input, shape index: {}]   ;;  %s1842_s4 = inlined_call_operand.vmem [shape: f32[1,64], index: 4, kind: input, shape index: {}]   ;;  %s1843_s5 = inlined_call_operand.vmem [shape: bf16[64,5], index: 5, kind: input, shape index: {}]   ;;  %s1844_s6 = inlined_call_operand.vmem [shape: f32[1,5], index: 6, kind: input, shape index: {}]   ;;  %s1845_s7 = inlined_call_operand.hbm [shape: f32[5,256], index: 7, kind: output, shape index: {}]  }
   0x1   :  { %14 = vsyncpa [#allocation3 + $0x1], 0  ;;  %s1519_s24 = smov 0   ;;  %s1521_s25 = smov 0  }
   0x2   :  { %s1523_s26 = smov 0   ;;  %s1525_s27 = smov 0  }
   0x3 LB: > { %s1540_s28 = sadd.s32 4294967295, %s1476_s27   ;;  %s1090_s29 = sadd.s32 4294967294, %s1476_s27   ;;  %s1476_s27 = sphi %s1525_s27, %s1851_s27   ;;  %s1472_s26 = sphi %s1523_s26, %s1850_s26   ;;  %s1468_s25 = sphi %s1521_s25, %s1849_s25   ;;  %s1464_s24 = sphi %s1519_s24, %s1848_s24  }
   0x4   : > { %s1544_s30 = sadd.s32 1, %s1476_s27   ;;  %s179_s8 = sadd.s32 1, %s1472_s26 }
   0x5   : > { %s176_s9 = ssub.s32 %s1476_s27, %s1544_s30  ;;  %p189_p0 = scmp.ne.s32.totalorder %s1472_s26, %s1468_s25 }
   0x6   : > { %p177_p1 = scmp.eq.s32.totalorder %s176_s9, 0  ;;  %p190_p2 = scmp.eq.s32.totalorder %s1540_s28, 1 }
   0x7   : > { %p195_p3 = scmp.ne.s32.totalorder %s1468_s25, %s1464_s24  ;;  %p196_p4 = scmp.eq.s32.totalorder %s1090_s29, 1 }
   0x8   : > { %s1555_s10 = scalar_select %p177_p1, %s1472_s26, %s179_s8  }
   0x9   : > { %p1557_p5 = por %p190_p2, %p189_p0  ;;  %p1561_p6 = por %p196_p4, %p195_p3 }
   0xa   : > { %p1093_p7 = scmp.ge.s32.totalorder %s1476_s27, 1  ;;  %p241_p8 = scmp.lt.s32.totalorder %s1476_s27, 3 }
   0xc   : > { %p242_p9 = pnand %p1093_p7, %p241_p8 }
   0xd   : > { %v304_v0 = vld [vmem:[%s1839_s1] sm:$0xf] (!%p242_p9)  ;;  %vm337_vm0 = vcmask (!%p242_p9), 1043456   ;;  %s1095_s15 = sshll.u32 (!%p242_p9), %s1540_s28, 4  ;;  %vm312_vm1 = vcmask (!%p242_p9), 64512   ;;  %v1279_v27 = vld [vmem:[%s1841_s3 + $0x8] sm:$0xff] (!%p242_p9)  }
   0xe   : > { %245 = sbr.rel (%p242_p9) target bundleno = 1165 (0x48d), region = 48  ;;  %1237 = vmatprep.subr.msk.bf16.mxu0 (!%p242_p9), %vm337_vm0, %v304_v0  ;;  %v339_v1 = vsel (!%p242_p9), %vm337_vm0, %v304_v0, 0  ;;  %p274_p10 = scmp.lt.s32.totalorder (!%p242_p9), %s1095_s15, 31  ;;  %1238 = vmatprep.subr.msk.bf16.mxu1 (!%p242_p9), %vm337_vm0, %v304_v0  ;;  %v1278_v26 = vld [vmem:[%s1841_s3] sm:$0xff] (!%p242_p9)   ;;  %v1280_v28 = vld [vmem:[%s1841_s3 + $0x10] sm:$0xff] (!%p242_p9)   ;;  %v1281_v29 = vld [vmem:[%s1841_s3 + $0x18] sm:$0xff] (!%p242_p9)  }
   0xf   : > { %1170 = vmatpush3.bf16.msra.mxu0 (!%p242_p9), %v339_v1  ;;  %1236 = vmatpush3.bf16.msra.mxu1 (!%p242_p9), %v339_v1  ;;  %v1097_v30 = vld [vmem:[%s1840_s2] ss:$0 sm:$0xff] (!%p242_p9)  ;;  %vm501_vm2 = vcmask (!%p242_p9), 523264   ;;  %vm807_vm3 = vcmask (!%p242_p9), 39936   ;;  %s270_s14 = sand.u32 (!%p242_p9), 1, %s1468_s25   ;;  %s1133_s18 = sshll.u32 (!%p242_p9), %s1540_s28, 7 }
  0x10   : > { %1187 = vmatprep.subr.bf16.mxu1 (!%p242_p9), %v1278_v26  ;;  %s1798_s21 = scalar_lea.hbm (!%p242_p9), %s1845_s7, %s1133_s18  ;;  %s1018_s22 = scalar_lea.sflag (!%p242_p9), [#allocation3], %s270_s14 }
  0x11   : > { %s1478_s29 = smov (!%p242_p9), [#allocation2]  }
  0x12   : > { %s1418_s28 = sshll.u32 (!%p242_p9), %s1478_s29, 4  ;;  %s1419_s28 = int_to_ptr.vmem [resolvable:$false] %s1418_s28 }
  0x13   : > { %s1420_s8 = scalar_lea.vmem (!%p242_p9), %s1419_s28, 256 }
  0x15   : > { %s1853_s15 = smov (!%p274_p10, %s1095_s15), 31 }
  0x16   : > { %s1096_s16 = sshll.u32 %s1853_s15, 3  ;;  %s1094_s15 = sshll.u32 %s270_s14, 3 }
  0x17   : > { %s277_s19 = scalar_lea.vmem %s1838_s0, %s1096_s16  ;;  %s272_s16 = scalar_lea.vmem [#allocation2], %s1094_s15 }
  0x18   : > { %v280_v2 = vld [vmem:[%s277_s19] sm:$0xff]  ;;  %v281_v3 = vld [vmem:[%s277_s19 + $0x8] sm:$0xff]  ;;  %v282_v4 = vld [vmem:[%s277_s19 + $0x10] sm:$0xff]  ;;  %s1031_s17 = sshll.u32 %s272_s16, 4  ;;  %s1793_s17 = int_to_ptr.vmem [resolvable:$true] %s1031_s17 }
  0x19   : > { %v296_v5 = vpack.c.bf16 %v281_v3, %v280_v2  ;;  %v283_v6 = vld [vmem:[%s277_s19 + $0x18] sm:$0xff]  ;;  %v284_v7 = vld [vmem:[%s277_s19 + $0x20] sm:$0xff]  ;;  %v285_v8 = vld [vmem:[%s277_s19 + $0x28] sm:$0xff]  ;;  %s1414_s23 = scalar_lea.vmem %s1793_s17, 128  ;;  %p1421_p0 = scmp.lt.s32.totalorder %s1793_s17, %s1419_s28 }
  0x1a   : > { %v297_v9 = vpack.c.bf16 %v283_v6, %v282_v4  ;;  %v298_v10 = vpack.c.bf16 %v285_v8, %v284_v7  ;;  %v288_v11 = vld [vmem:[%s277_s19 + $0x40] sm:$0xff]  ;;  %v289_v12 = vld [vmem:[%s277_s19 + $0x48] sm:$0xff]  ;;  %v290_v13 = vld [vmem:[%s277_s19 + $0x50] sm:$0xff]  ;;  %p1415_p11 = scmp.ne.s32.totalorder %s1793_s17, %s1414_s23  ;;  %p1422_p1 = scmp.lt.s32.totalorder %s1420_s8, %s1414_s23 }
  0x1b   : > { %1171 = vmatprep.mubr.msk.bf16.mxu0 %vm312_vm1, %v296_v5  ;;  %v291_v14 = vld [vmem:[%s277_s19 + $0x58] sm:$0xff]  ;;  %v300_v15 = vpack.c.bf16 %v289_v12, %v288_v11  ;;  %v292_v17 = vld [vmem:[%s277_s19 + $0x60] sm:$0xff]  ;;  %v293_v18 = vld [vmem:[%s277_s19 + $0x68] sm:$0xff] }
  0x1c   : > { %1172 = vmatmul.mubr.msk.bf16.vlgmr.msra.gmra.mrb[0].mxu0 %vm312_vm1, %v297_v9  ;;  %v301_v16 = vpack.c.bf16 %v291_v14, %v290_v13  ;;  %v286_v19 = vld [vmem:[%s277_s19 + $0x30] sm:$0xff]  ;;  %v287_v20 = vld [vmem:[%s277_s19 + $0x38] sm:$0xff]  ;;  %v302_v21 = vpack.c.bf16 %v293_v18, %v292_v17  ;;  %p1416_p12 = pnand %p1415_p11, %p1557_p5  ;;  %p1423_p2 = por %p1422_p1, %p1421_p0 }
  0x1d   : > { %1175 = vmatprep.mubr.msk.bf16.mxu0 %vm312_vm1, %v298_v10  ;;  %1179 = vmatprep.mubr.msk.bf16.mxu1 %vm312_vm1, %v300_v15  ;;  %v299_v22 = vpack.c.bf16 %v287_v20, %v286_v19  ;;  %v294_v23 = vld [vmem:[%s277_s19 + $0x70] sm:$0xff]  ;;  %v295_v24 = vld [vmem:[%s277_s19 + $0x78] sm:$0xff] }
  0x1e   : > { %1180 = vmatmul.mubr.msk.bf16.vlgmr.msra.gmra.mrb[0].mxu1 %vm312_vm1, %v301_v16  ;;  %v303_v25 = vpack.c.bf16 %v295_v24, %v294_v23  ;;  %v1282_v23 = vld [vmem:[%s1843_s5] sm:$0xff]   ;;  %v1283_v24 = vld [vmem:[%s1843_s5 + $0x8] sm:$0xff]   ;;  %p1417_p13 = pneg %p1416_p12 }
  0x1f   : > { %1183 = vmatprep.mubr.msk.bf16.mxu1 %vm312_vm1, %v302_v21  ;;  %1188 = vmatpush3.bf16.msra.mxu1 %v1278_v26  ;;  %v1285_v26 = vld [vmem:[%s1843_s5 + $0x18] sm:$0xff]  }
  0x20   : > { %1189 = vmatprep.subr.bf16.mxu1 %v1279_v27  ;;  %1211 = vmatprep.subr.bf16.mxu0 %v1282_v23  ;;  %p1424_p3 = pnand %p1423_p2, %p1417_p13 }
  0x21   : > { %1212 = vmatpush3.bf16.msra.mxu0 %v1282_v23 }
  0x22   : > { %1213 = vmatprep.subr.bf16.mxu0 %v1283_v24 }
  0x23   : > { %1190 = vmatpush3.bf16.msra.mxu1 %v1279_v27  ;;  %v1106_v27 = vld [vmem:[%s1842_s4] ss:$0 sm:$0xff] }
  0x24   : > { %1176 = vmatmul.mubr.msk.bf16.gmra.mrb[4].mxu0 %vm312_vm1, %v299_v22  ;;  %1191 = vmatprep.subr.bf16.mxu1 %v1280_v28 }
  0x25   : > { %1214 = vmatpush3.bf16.msra.mxu0 %v1283_v24 }
  0x26   : > { %1184 = vmatmul.mubr.msk.bf16.gmra.mrb[4].mxu1 %vm312_vm1, %v303_v25  ;;  %v1284_v25 = vld [vmem:[%s1843_s5 + $0x10] sm:$0xff]  }
  0x27   : > { %1192 = vmatpush3.bf16.msra.mxu1 %v1280_v28  ;;  %1215 = vmatprep.subr.bf16.mxu0 %v1284_v25 }
  0x28   : > { %1193 = vmatprep.subr.bf16.mxu1 %v1281_v29 }
  0x29   : > { %1216 = vmatpush3.bf16.msra.mxu0 %v1284_v25 }
  0x2a   : > { %1217 = vmatprep.subr.bf16.mxu0 %v1285_v26 }
  0x2b   : > { %1194 = vmatpush3.bf16.msra.mxu1 %v1281_v29 }
  0x2d   : > { %1218 = vmatpush3.bf16.msra.mxu0 %v1285_v26 }
  0xef   : > { %v1173_v31 = vpop.f32.mrb[0].mxu0 }
  0xf0   : > { %v384_v32 = vadd.f32 %v1173_v31, %v1097_v30  ;;  %v375_v33 = vpop.f32.mrb[1].mxu0 }
  0xf1   : > { %v376_v34 = vadd.f32 %v1097_v30, %v375_v33  ;;  %v1174_v35 = vpop.f32.mrb[2].mxu0  ;;  %v1181_v38 = vpop.f32.mrb[0].mxu1 }
  0xf2   : > { %1286 = vtanh.f32 %v384_v32  ;;  %v387_v36 = vadd.f32 %v1174_v35, %v1097_v30  ;;  %v378_v37 = vpop.f32.mrb[3].mxu0  ;;  %v416_v40 = vadd.f32 %v1181_v38, %v1097_v30  ;;  %v407_v41 = vpop.f32.mrb[1].mxu1 }
  0xf3   : > { %1288 = vtanh.f32 %v376_v34  ;;  %v379_v39 = vadd.f32 %v1097_v30, %v378_v37  ;;  %v408_v42 = vadd.f32 %v1097_v30, %v407_v41  ;;  %v1182_v43 = vpop.f32.mrb[2].mxu1 }
  0xf4   : > { %1290 = vtanh.f32 %v387_v36  ;;  %v419_v44 = vadd.f32 %v1182_v43, %v1097_v30  ;;  %v410_v45 = vpop.f32.mrb[3].mxu1 }
  0xf5   : > { %1292 = vtanh.f32 %v379_v39  ;;  %v411_v46 = vadd.f32 %v1097_v30, %v410_v45 }
  0xf6   : > { %1294 = vtanh.f32 %v416_v40 }
  0xf7   : > { %v1177_v47 = vpop.f32.mrb[4].mxu0  ;;  %1296 = vtanh.f32 %v408_v42 }
  0xf8   : > { %v400_v48 = vadd.f32 %v1177_v47, %v1097_v30  ;;  %v391_v49 = vpop.f32.mrb[5].mxu0  ;;  %1298 = vtanh.f32 %v419_v44 }
  0xf9   : > { %v392_v50 = vadd.f32 %v1097_v30, %v391_v49  ;;  %v1178_v51 = vpop.f32.mrb[6].mxu0  ;;  %1300 = vtanh.f32 %v411_v46  ;;  %v1185_v54 = vpop.f32.mrb[4].mxu1 }
  0xfa   : > { %1302 = vtanh.f32 %v400_v48  ;;  %v403_v52 = vadd.f32 %v1178_v51, %v1097_v30  ;;  %v394_v53 = vpop.f32.mrb[7].mxu0  ;;  %v432_v56 = vadd.f32 %v1185_v54, %v1097_v30  ;;  %v423_v57 = vpop.f32.mrb[5].mxu1 }
  0xfb   : > { %1304 = vtanh.f32 %v392_v50  ;;  %v395_v55 = vadd.f32 %v1097_v30, %v394_v53  ;;  %v424_v59 = vadd.f32 %v1097_v30, %v423_v57  ;;  %v1186_v60 = vpop.f32.mrb[6].mxu1 }
  0xfc   : > { %v1287_v58 = vpop.eup %1286  ;;  %1306 = vtanh.f32 %v403_v52  ;;  %v435_v62 = vadd.f32 %v1186_v60, %v1097_v30  ;;  %v426_v63 = vpop.f32.mrb[7].mxu1 }
  0xfd   : > { %v1289_v61 = vpop.eup %1288  ;;  %1308 = vtanh.f32 %v395_v55  ;;  %v427_v1 = vadd.f32 %v1097_v30, %v426_v63 }
  0xfe   : > { %v1291_v0 = vpop.eup %1290  ;;  %1310 = vtanh.f32 %v432_v56 }
  0xff   : > { %v1293_v2 = vpop.eup %1292  ;;  %v455_v3 = vpack.c.bf16 %v1291_v0, %v1287_v58  ;;  %1312 = vtanh.f32 %v424_v59 }
 0x100   : > { %v1295_v4 = vpop.eup %1294  ;;  %v454_v5 = vpack.c.bf16 %v1293_v2, %v1289_v61  ;;  %1314 = vtanh.f32 %v435_v62 }
 0x101   : > { %v1297_v6 = vpop.eup %1296  ;;  %1316 = vtanh.f32 %v427_v1 }
 0x102   : > { %v1299_v7 = vpop.eup %1298  ;;  %1195 = vmatprep.mubr.msk.bf16.mxu1 %vm501_vm2, %v454_v5 }
 0x103   : > { %v1301_v8 = vpop.eup %1300  ;;  %1196 = vmatmul.mubr.msk.bf16.vlgmr.msra.gmra.mrb[8].mxu1 %vm501_vm2, %v455_v3  ;;  %v459_v9 = vpack.c.bf16 %v1299_v7, %v1295_v4 }
 0x104   : > { %v1303_v10 = vpop.eup %1302  ;;  %v458_v11 = vpack.c.bf16 %v1301_v8, %v1297_v6 }
 0x105   : > { %v1305_v12 = vpop.eup %1304 }
 0x106   : > { %v1307_v13 = vpop.eup %1306 }
 0x107   : > { %v1309_v14 = vpop.eup %1308  ;;  %v457_v15 = vpack.c.bf16 %v1307_v13, %v1303_v10 }
 0x108   : > { %v1311_v16 = vpop.eup %1310  ;;  %v456_v17 = vpack.c.bf16 %v1309_v14, %v1305_v12 }
 0x109   : > { %v1313_v18 = vpop.eup %1312 }
 0x10a   : > { %v1315_v19 = vpop.eup %1314  ;;  %1199 = vmatprep.mubr.msk.bf16.mxu1 %vm501_vm2, %v456_v17 }
 0x10b   : > { %v1317_v20 = vpop.eup %1316  ;;  %1200 = vmatmul.mubr.msk.bf16.gmra.mrb[12].mxu1 %vm501_vm2, %v457_v15  ;;  %v461_v21 = vpack.c.bf16 %v1315_v19, %v1311_v16 }
 0x10c   : > { %1203 = vmatprep.mubr.msk.bf16.mxu1 %vm501_vm2, %v458_v11  ;;  %v460_v22 = vpack.c.bf16 %v1317_v20, %v1313_v18  ;;  %v1119_v20 = vld [vmem:[%s1844_s6] ss:$0 sm:$0xff] }
 0x113   : > { %1204 = vmatmul.mubr.msk.bf16.gmra.mrb[16].mxu1 %vm501_vm2, %v459_v9 }
 0x114   : > { %1207 = vmatprep.mubr.msk.bf16.mxu1 %vm501_vm2, %v460_v22 }
 0x11b   : > { %1208 = vmatmul.mubr.msk.bf16.gmra.mrb[20].mxu1 %vm501_vm2, %v461_v21 }
 0x1d6   : > { %v1197_v28 = vpop.f32.mrb[8].mxu1 }
 0x1d7   : > { %v569_v29 = vadd.f32 %v1197_v28, %v1106_v27  ;;  %v560_v30 = vpop.f32.mrb[9].mxu1 }
 0x1d8   : > { %v561_v31 = vadd.f32 %v1106_v27, %v560_v30  ;;  %v1198_v32 = vpop.f32.mrb[10].mxu1 }
 0x1d9   : > { %1318 = vtanh.f32 %v569_v29  ;;  %v572_v33 = vadd.f32 %v1198_v32, %v1106_v27  ;;  %v563_v34 = vpop.f32.mrb[11].mxu1 }
 0x1da   : > { %1320 = vtanh.f32 %v561_v31  ;;  %v564_v35 = vadd.f32 %v1106_v27, %v563_v34 }
 0x1db   : > { %1322 = vtanh.f32 %v572_v33 }
 0x1dc   : > { %1324 = vtanh.f32 %v564_v35 }
 0x1de   : > { %v1201_v36 = vpop.f32.mrb[12].mxu1 }
 0x1df   : > { %v585_v37 = vadd.f32 %v1201_v36, %v1106_v27  ;;  %v576_v38 = vpop.f32.mrb[13].mxu1 }
 0x1e0   : > { %v577_v39 = vadd.f32 %v1106_v27, %v576_v38  ;;  %v1202_v40 = vpop.f32.mrb[14].mxu1 }
 0x1e1   : > { %1326 = vtanh.f32 %v585_v37  ;;  %v588_v41 = vadd.f32 %v1202_v40, %v1106_v27  ;;  %v579_v42 = vpop.f32.mrb[15].mxu1 }
 0x1e2   : > { %1328 = vtanh.f32 %v577_v39  ;;  %v580_v43 = vadd.f32 %v1106_v27, %v579_v42 }
 0x1e3   : > { %v1319_v44 = vpop.eup %1318  ;;  %1330 = vtanh.f32 %v588_v41 }
 0x1e4   : > { %v1321_v45 = vpop.eup %1320  ;;  %1332 = vtanh.f32 %v580_v43 }
 0x1e5   : > { %v1323_v46 = vpop.eup %1322 }
 0x1e6   : > { %v1325_v47 = vpop.eup %1324  ;;  %v640_v48 = vpack.c.bf16 %v1323_v46, %v1319_v44  ;;  %v1205_v49 = vpop.f32.mrb[16].mxu1 }
 0x1e7   : > { %v601_v50 = vadd.f32 %v1205_v49, %v1106_v27  ;;  %v592_v51 = vpop.f32.mrb[17].mxu1  ;;  %v639_v52 = vpack.c.bf16 %v1325_v47, %v1321_v45 }
 0x1e8   : > { %v593_v53 = vadd.f32 %v1106_v27, %v592_v51  ;;  %v1206_v54 = vpop.f32.mrb[18].mxu1 }
 0x1e9   : > { %1334 = vtanh.f32 %v601_v50  ;;  %v604_v55 = vadd.f32 %v1206_v54, %v1106_v27  ;;  %v595_v56 = vpop.f32.mrb[19].mxu1  ;;  %1219 = vmatprep.mubr.msk.bf16.mxu0 %vm501_vm2, %v639_v52 }
 0x1ea   : > { %1336 = vtanh.f32 %v593_v53  ;;  %v596_v57 = vadd.f32 %v1106_v27, %v595_v56  ;;  %1220 = vmatmul.mubr.msk.bf16.vlgmr.msra.gmra.mrb[8].mxu0 %vm501_vm2, %v640_v48 }
 0x1eb   : > { %v1327_v58 = vpop.eup %1326  ;;  %1338 = vtanh.f32 %v604_v55 }
 0x1ec   : > { %v1329_v59 = vpop.eup %1328  ;;  %1340 = vtanh.f32 %v596_v57 }
 0x1ed   : > { %v1331_v60 = vpop.eup %1330 }
 0x1ee   : > { %v1333_v61 = vpop.eup %1332  ;;  %v1209_v62 = vpop.f32.mrb[20].mxu1  ;;  %v642_v63 = vpack.c.bf16 %v1331_v60, %v1327_v58 }
 0x1ef   : > { %v617_v0 = vadd.f32 %v1209_v62, %v1106_v27  ;;  %v608_v1 = vpop.f32.mrb[21].mxu1  ;;  %v641_v2 = vpack.c.bf16 %v1333_v61, %v1329_v59 }
 0x1f0   : > { %v609_v3 = vadd.f32 %v1106_v27, %v608_v1  ;;  %v1210_v4 = vpop.f32.mrb[22].mxu1 }
 0x1f1   : > { %1342 = vtanh.f32 %v617_v0  ;;  %v620_v5 = vadd.f32 %v1210_v4, %v1106_v27  ;;  %v611_v6 = vpop.f32.mrb[23].mxu1  ;;  %1223 = vmatprep.mubr.msk.bf16.mxu0 %vm501_vm2, %v641_v2 }
 0x1f2   : > { %1344 = vtanh.f32 %v609_v3  ;;  %v612_v7 = vadd.f32 %v1106_v27, %v611_v6  ;;  %1224 = vmatmul.mubr.msk.bf16.gmra.mrb[12].mxu0 %vm501_vm2, %v642_v63 }
 0x1f3   : > { %v1335_v8 = vpop.eup %1334  ;;  %1346 = vtanh.f32 %v620_v5 }
 0x1f4   : > { %v1337_v9 = vpop.eup %1336  ;;  %1348 = vtanh.f32 %v612_v7 }
 0x1f5   : > { %v1339_v10 = vpop.eup %1338 }
 0x1f6   : > { %v1341_v11 = vpop.eup %1340  ;;  %v644_v12 = vpack.c.bf16 %v1339_v10, %v1335_v8 }
 0x1f7   : > { %v643_v13 = vpack.c.bf16 %v1341_v11, %v1337_v9 }
 0x1f9   : > { %1227 = vmatprep.mubr.msk.bf16.mxu0 %vm501_vm2, %v643_v13 }
 0x1fa   : > { %1228 = vmatmul.mubr.msk.bf16.gmra.mrb[16].mxu0 %vm501_vm2, %v644_v12 }
 0x1fb   : > { %v1343_v14 = vpop.eup %1342 }
 0x1fc   : > { %v1345_v15 = vpop.eup %1344 }
 0x1fd   : > { %v1347_v16 = vpop.eup %1346 }
 0x1fe   : > { %v1349_v17 = vpop.eup %1348  ;;  %v646_v18 = vpack.c.bf16 %v1347_v16, %v1343_v14 }
 0x1ff   : > { %v645_v19 = vpack.c.bf16 %v1349_v17, %v1345_v15 }
 0x201   : > { %1231 = vmatprep.mubr.msk.bf16.mxu0 %vm501_vm2, %v645_v19 }
 0x202   : > { %1232 = vmatmul.mubr.msk.bf16.gmra.mrb[20].mxu0 %vm501_vm2, %v646_v18 }
 0x2bd   : > { %v1221_v21 = vpop.f32.mrb[8].mxu0 }
 0x2be   : > { %v1631_v22 = vadd.f32 %v1221_v21, %v1119_v20  ;;  %v744_v23 = vpop.f32.mrb[9].mxu0 }
 0x2bf   : > { %v1633_v24 = vadd.f32 %v1119_v20, %v744_v23  ;;  %v1222_v25 = vpop.f32.mrb[10].mxu0 }
 0x2c0   : > { %v1635_v26 = vadd.f32 %v1222_v25, %v1119_v20  ;;  %v747_v27 = vpop.f32.mrb[11].mxu0  ;;  %v814_v28 = vsel %vm807_vm3, %v1631_v22, -inf }
 0x2c1   : > { %v1639_v29 = vadd.f32 %v1119_v20, %v747_v27  ;;  %815 = vmax.xlane.f32.xlu1 %v814_v28  ;;  %v808_v30 = vsel %vm807_vm3, %v1633_v24, -inf }
 0x2c2   : > { %809 = vmax.xlane.f32.xlu0 %v808_v30  ;;  %v817_v31 = vsel %vm807_vm3, %v1635_v26, -inf }
 0x2c3   : > { %v811_v33 = vsel %vm807_vm3, %v1639_v29, -inf }
 0x2c5   : > { %818 = vmax.xlane.f32.xlu1 %v817_v31  ;;  %v1225_v32 = vpop.f32.mrb[12].mxu0 }
 0x2c6   : > { %v760_v34 = vpop.f32.mrb[13].mxu0  ;;  %812 = vmax.xlane.f32.xlu0 %v811_v33  ;;  %v1649_v38 = vadd.f32 %v1225_v32, %v1119_v20 }
 0x2c7   : > { %v1647_v35 = vadd.f32 %v1119_v20, %v760_v34  ;;  %v1226_v36 = vpop.f32.mrb[14].mxu0 }
 0x2c8   : > { %v763_v37 = vpop.f32.mrb[15].mxu0  ;;  %v1655_v41 = vadd.f32 %v1226_v36, %v1119_v20  ;;  %v826_v44 = vsel %vm807_vm3, %v1649_v38, -inf }
 0x2c9   : > { %v1651_v39 = vadd.f32 %v1119_v20, %v763_v37  ;;  %v820_v40 = vsel %vm807_vm3, %v1647_v35, -inf }
 0x2ca   : > { %821 = vmax.xlane.f32.xlu0 %v820_v40  ;;  %v829_v48 = vsel %vm807_vm3, %v1655_v41, -inf }
 0x2cb   : > { %v823_v42 = vsel %vm807_vm3, %v1651_v39, -inf }
 0x2cc   : > { %824 = vmax.xlane.f32.xlu1 %v823_v42 }
 0x2cd   : > { %v1229_v43 = vpop.f32.mrb[16].mxu0 }
 0x2ce   : > { %v776_v45 = vpop.f32.mrb[17].mxu0  ;;  %827 = vmax.xlane.f32.xlu0 %v826_v44  ;;  %v1665_v50 = vadd.f32 %v1229_v43, %v1119_v20 }
 0x2cf   : > { %v1661_v46 = vadd.f32 %v1119_v20, %v776_v45  ;;  %v1230_v47 = vpop.f32.mrb[18].mxu0 }
 0x2d0   : > { %v779_v49 = vpop.f32.mrb[19].mxu0  ;;  %830 = vmax.xlane.f32.xlu1 %v829_v48  ;;  %v1671_v53 = vadd.f32 %v1230_v47, %v1119_v20  ;;  %v838_v56 = vsel %vm807_vm3, %v1665_v50, -inf }
 0x2d1   : > { %v1667_v51 = vadd.f32 %v1119_v20, %v779_v49  ;;  %v832_v52 = vsel %vm807_vm3, %v1661_v46, -inf }
 0x2d2   : > { %833 = vmax.xlane.f32.xlu0 %v832_v52  ;;  %v841_v61 = vsel %vm807_vm3, %v1671_v53, -inf }
 0x2d3   : > { %v835_v54 = vsel %vm807_vm3, %v1667_v51, -inf }
 0x2d4   : > { %836 = vmax.xlane.f32.xlu1 %v835_v54 }
 0x2d5   : > { %v1233_v55 = vpop.f32.mrb[20].mxu0 }
 0x2d6   : > { %v792_v57 = vpop.f32.mrb[21].mxu0  ;;  %839 = vmax.xlane.f32.xlu0 %v838_v56  ;;  %v1677_v58 = vadd.f32 %v1233_v55, %v1119_v20 }
 0x2d7   : > { %v1679_v59 = vadd.f32 %v1119_v20, %v792_v57  ;;  %v1234_v60 = vpop.f32.mrb[22].mxu0 }
 0x2d8   : > { %v795_v62 = vpop.f32.mrb[23].mxu0  ;;  %842 = vmax.xlane.f32.xlu1 %v841_v61  ;;  %v1683_v63 = vadd.f32 %v1234_v60, %v1119_v20  ;;  %v850_v3 = vsel %vm807_vm3, %v1677_v58, -inf }
 0x2d9   : > { %v1685_v0 = vadd.f32 %v1119_v20, %v795_v62  ;;  %v844_v1 = vsel %vm807_vm3, %v1679_v59, -inf }
 0x2da   : > { %845 = vmax.xlane.f32.xlu0 %v844_v1  ;;  %v853_v4 = vsel %vm807_vm3, %v1683_v63, -inf }
 0x2db   : > { %v847_v2 = vsel %vm807_vm3, %v1685_v0, -inf }
 0x2dc   : > { %848 = vmax.xlane.f32.xlu1 %v847_v2 }
 0x2de   : > { %851 = vmax.xlane.f32.xlu0 %v850_v3 }
 0x2e0   : > { %854 = vmax.xlane.f32.xlu1 %v853_v4 }
 0x34e   : > { %v816_v5 = vpop.xlane.xlu1 %815 }
 0x34f   : > { %v858_v6 = vsub.f32 %v1631_v22, %v816_v5  ;;  %v810_v7 = vpop.xlane.xlu0 %809 }
 0x350   : > { %v856_v8 = vsub.f32 %v1633_v24, %v810_v7 }
 0x351   : > { %v876_v9 = vmul.f32 1.442695, %v858_v6 }
 0x352   : > { %v872_v10 = vmul.f32 1.442695, %v856_v8  ;;  %v819_v11 = vpop.xlane.xlu1 %818 }
 0x353   : > { %1350 = vpow2.f32 %v876_v9  ;;  %v859_v12 = vsub.f32 %v1635_v26, %v819_v11  ;;  %v813_v13 = vpop.xlane.xlu0 %812 }
 0x354   : > { %v857_v14 = vsub.f32 %v1639_v29, %v813_v13  ;;  %1352 = vpow2.f32 %v872_v10 }
 0x355   : > { %v878_v15 = vmul.f32 1.442695, %v859_v12 }
 0x356   : > { %v874_v16 = vmul.f32 1.442695, %v857_v14 }
 0x357   : > { %v822_v17 = vpop.xlane.xlu0 %821 }
 0x358   : > { %1354 = vpow2.f32 %v874_v16  ;;  %v860_v18 = vsub.f32 %v1647_v35, %v822_v17 }
 0x359   : > { %v825_v19 = vpop.xlane.xlu1 %824  ;;  %1356 = vpow2.f32 %v878_v15 }
 0x35a   : > { %v861_v20 = vsub.f32 %v1651_v39, %v825_v19  ;;  %v880_v25 = vmul.f32 1.442695, %v860_v18 }
 0x35b   : > { %v828_v21 = vpop.xlane.xlu0 %827 }
 0x35c   : > { %v882_v22 = vmul.f32 1.442695, %v861_v20  ;;  %v862_v23 = vsub.f32 %v1649_v38, %v828_v21 }
 0x35d   : > { %v1702_v24 = vpop.eup %1350  ;;  %v831_v26 = vpop.xlane.xlu1 %830 }
 0x35e   : > { %1358 = vpow2.f32 %v882_v22  ;;  %v884_v27 = vmul.f32 1.442695, %v862_v23  ;;  %v863_v28 = vsub.f32 %v1655_v41, %v831_v26  ;;  %v910_v29 = vsel %vm807_vm3, %v1702_v24, 0.0  ;;  %v1707_v30 = vpop.eup %1352 }
 0x35f   : > { %911 = vadd.xlane.f32.xlu0 %v910_v29  ;;  %v834_v31 = vpop.xlane.xlu0 %833  ;;  %v904_v37 = vsel %vm807_vm3, %v1707_v30, 0.0 }
 0x360   : > { %1360 = vpow2.f32 %v884_v27  ;;  %v886_v32 = vmul.f32 1.442695, %v863_v28  ;;  %v864_v33 = vsub.f32 %v1661_v46, %v834_v31 }
 0x361   : > { %1362 = vpow2.f32 %v880_v25  ;;  %v837_v34 = vpop.xlane.xlu1 %836 }
 0x362   : > { %v1710_v35 = vpop.eup %1354  ;;  %1364 = vpow2.f32 %v886_v32  ;;  %v865_v36 = vsub.f32 %v1667_v51, %v837_v34  ;;  %v888_v43 = vmul.f32 1.442695, %v864_v33 }
 0x363   : > { %905 = vadd.xlane.f32.xlu0 %v904_v37  ;;  %v840_v38 = vpop.xlane.xlu0 %839  ;;  %v907_v39 = vsel %vm807_vm3, %v1710_v35, 0.0  ;;  %v1717_v40 = vpop.eup %1356 }
 0x364   : > { %v890_v41 = vmul.f32 1.442695, %v865_v36  ;;  %v866_v42 = vsub.f32 %v1665_v50, %v840_v38  ;;  %908 = vadd.xlane.f32.xlu1 %v907_v39  ;;  %v913_v48 = vsel %vm807_vm3, %v1717_v40, 0.0 }
 0x365   : > { %v843_v44 = vpop.xlane.xlu1 %842 }
 0x366   : > { %1366 = vpow2.f32 %v890_v41  ;;  %v892_v45 = vmul.f32 1.442695, %v866_v42  ;;  %v867_v46 = vsub.f32 %v1671_v53, %v843_v44 }
 0x367   : > { %v846_v47 = vpop.xlane.xlu0 %845 }
 0x368   : > { %v1723_v49 = vpop.eup %1358  ;;  %1368 = vpow2.f32 %v892_v45  ;;  %v894_v51 = vmul.f32 1.442695, %v867_v46  ;;  %914 = vadd.xlane.f32.xlu1 %v913_v48  ;;  %v868_v52 = vsub.f32 %v1679_v59, %v846_v47 }
 0x369   : > { %1370 = vpow2.f32 %v888_v43  ;;  %v849_v50 = vpop.xlane.xlu1 %848  ;;  %v919_v57 = vsel %vm807_vm3, %v1723_v49, 0.0 }
 0x36a   : > { %v1726_v54 = vpop.eup %1360  ;;  %1372 = vpow2.f32 %v894_v51  ;;  %v869_v55 = vsub.f32 %v1685_v0, %v849_v50  ;;  %v896_v1 = vmul.f32 1.442695, %v868_v52 }
 0x36b   : > { %v1729_v56 = vpop.eup %1362  ;;  %v852_v53 = vpop.xlane.xlu0 %851  ;;  %v922_v60 = vsel %vm807_vm3, %v1726_v54, 0.0 }
 0x36c   : > { %v1735_v61 = vpop.eup %1364  ;;  %v898_v62 = vmul.f32 1.442695, %v869_v55  ;;  %v870_v59 = vsub.f32 %v1677_v58, %v852_v53  ;;  %920 = vadd.xlane.f32.xlu1 %v919_v57  ;;  %923 = vadd.xlane.f32.xlu0 %v922_v60  ;;  %v916_v5 = vsel %vm807_vm3, %v1729_v56, 0.0 }
 0x36d   : > { %v855_v2 = vpop.xlane.xlu1 %854  ;;  %v925_v4 = vsel %vm807_vm3, %v1735_v61, 0.0 }
 0x36e   : > { %1374 = vpow2.f32 %v898_v62  ;;  %v900_v0 = vmul.f32 1.442695, %v870_v59  ;;  %v871_v3 = vsub.f32 %v1683_v63, %v855_v2 }
 0x370   : > { %v1743_v6 = vpop.eup %1366  ;;  %1376 = vpow2.f32 %v900_v0  ;;  %v902_v7 = vmul.f32 1.442695, %v871_v3  ;;  %926 = vadd.xlane.f32.xlu1 %v925_v4  ;;  %917 = vadd.xlane.f32.xlu0 %v916_v5 }
 0x371   : > { %1378 = vpow2.f32 %v896_v1  ;;  %v931_v63 = vsel %vm807_vm3, %v1743_v6, 0.0 }
 0x372   : > { %v1745_v58 = vpop.eup %1368  ;;  %1380 = vpow2.f32 %v902_v7 }
 0x373   : > { %v1747_v8 = vpop.eup %1370  ;;  %v934_v9 = vsel %vm807_vm3, %v1745_v58, 0.0 }
 0x374   : > { %v1753_v10 = vpop.eup %1372  ;;  %932 = vadd.xlane.f32.xlu1 %v931_v63  ;;  %935 = vadd.xlane.f32.xlu0 %v934_v9  ;;  %v928_v12 = vsel %vm807_vm3, %v1747_v8, 0.0 }
 0x375   : > { %v937_v11 = vsel %vm807_vm3, %v1753_v10, 0.0 }
 0x378   : > { %v1759_v13 = vpop.eup %1374  ;;  %938 = vadd.xlane.f32.xlu1 %v937_v11  ;;  %929 = vadd.xlane.f32.xlu0 %v928_v12 }
 0x379   : > { %v943_v16 = vsel %vm807_vm3, %v1759_v13, 0.0 }
 0x37a   : > { %v1761_v14 = vpop.eup %1376 }
 0x37b   : > { %v1763_v15 = vpop.eup %1378  ;;  %v946_v17 = vsel %vm807_vm3, %v1761_v14, 0.0 }
 0x37c   : > { %v1769_v18 = vpop.eup %1380  ;;  %944 = vadd.xlane.f32.xlu1 %v943_v16  ;;  %947 = vadd.xlane.f32.xlu0 %v946_v17  ;;  %v940_v20 = vsel %vm807_vm3, %v1763_v15, 0.0 }
 0x37d   : > { %v949_v19 = vsel %vm807_vm3, %v1769_v18, 0.0 }
 0x380   : > { %950 = vadd.xlane.f32.xlu1 %v949_v19  ;;  %941 = vadd.xlane.f32.xlu0 %v940_v20 }
 0x3ec   : > { %v912_v21 = vpop.xlane.xlu0 %911 }
 0x3f0   : > { %v906_v22 = vpop.xlane.xlu0 %905 }
 0x3f1   : > { %1382 = vrcp.f32 %v906_v22  ;;  %v909_v23 = vpop.xlane.xlu1 %908 }
 0x3f2   : > { %1384 = vrcp.f32 %v909_v23 }
 0x3f3   : > { %1386 = vrcp.f32 %v912_v21 }
 0x3f5   : > { %v915_v25 = vpop.xlane.xlu1 %914 }
 0x3f6   : > { %1388 = vrcp.f32 %v915_v25 }
 0x3f9   : > { %v924_v26 = vpop.xlane.xlu0 %923  ;;  %v921_v32 = vpop.xlane.xlu1 %920 }
 0x3fb   : > { %v1383_v27 = vpop.eup %1382 }
 0x3fc   : > { %v953_v28 = vmul.f32 %v1383_v27, %v1707_v30  ;;  %v1385_v29 = vpop.eup %1384 }
 0x3fd   : > { %v918_v31 = vpop.xlane.xlu0 %917  ;;  %v955_v33 = vmul.f32 %v1385_v29, %v1710_v35  ;;  %v1387_v34 = vpop.eup %1386 }
 0x3fe   : > { %984 = vxpose.xlu0.b32.start [1/16] (narrow) %v953_v28, 8  ;;  %1390 = vrcp.f32 %v918_v31  ;;  %v957_v36 = vmul.f32 %v1387_v34, %v1702_v24  ;;  %v927_v39 = vpop.xlane.xlu1 %926 }
 0x3ff   : > { %1392 = vrcp.f32 %v921_v32 }
 0x400   : > { %v1389_v37 = vpop.eup %1388  ;;  %1394 = vrcp.f32 %v924_v26 }
 0x401   : > { %v936_v38 = vpop.xlane.xlu0 %935  ;;  %v959_v41 = vmul.f32 %v1389_v37, %v1717_v40  ;;  %1396 = vrcp.f32 %v927_v39 }
 0x402   : > { %985 = vxpose.xlu0.b32.cont [2/16] (narrow) %v955_v33, 8  ;;  %v933_v35 = vpop.xlane.xlu1 %932 }
 0x405   : > { %v930_v42 = vpop.xlane.xlu0 %929 }
 0x406   : > { %986 = vxpose.xlu0.b32.cont [3/16] (narrow) %v957_v36, 8  ;;  %1398 = vrcp.f32 %v930_v42  ;;  %v939_v40 = vpop.xlane.xlu1 %938 }
 0x407   : > { %1400 = vrcp.f32 %v933_v35 }
 0x408   : > { %v1391_v30 = vpop.eup %1390  ;;  %1402 = vrcp.f32 %v936_v38 }
 0x409   : > { %v961_v43 = vmul.f32 %v1391_v30, %v1729_v56  ;;  %v1393_v44 = vpop.eup %1392  ;;  %v948_v48 = vpop.xlane.xlu0 %947  ;;  %1404 = vrcp.f32 %v939_v40 }
 0x40a   : > { %987 = vxpose.xlu0.b32.cont [4/16] (narrow) %v959_v41, 8  ;;  %v963_v45 = vmul.f32 %v1393_v44, %v1723_v49  ;;  %v1395_v24 = vpop.eup %1394  ;;  %v945_v49 = vpop.xlane.xlu1 %944 }
 0x40b   : > { %v965_v46 = vmul.f32 %v1395_v24, %v1726_v54  ;;  %v1397_v47 = vpop.eup %1396 }
 0x40c   : > { %v967_v51 = vmul.f32 %v1397_v47, %v1735_v61 }
 0x40d   : > { %v942_v50 = vpop.xlane.xlu0 %941 }
 0x40e   : > { %988 = vxpose.xlu0.b32.cont [5/16] (narrow) %v961_v43, 8  ;;  %1406 = vrcp.f32 %v942_v50  ;;  %v951_v61 = vpop.xlane.xlu1 %950 }
 0x40f   : > { %1408 = vrcp.f32 %v945_v49 }
 0x410   : > { %v1399_v52 = vpop.eup %1398  ;;  %1410 = vrcp.f32 %v948_v48 }
 0x411   : > { %v969_v55 = vmul.f32 %v1399_v52, %v1747_v8  ;;  %v1401_v56 = vpop.eup %1400  ;;  %1412 = vrcp.f32 %v951_v61 }
 0x412   : > { %989 = vxpose.xlu0.b32.cont [6/16] (narrow) %v963_v45, 8  ;;  %v971_v53 = vmul.f32 %v1401_v56, %v1743_v6  ;;  %v1403_v54 = vpop.eup %1402 }
 0x413   : > { %v973_v57 = vmul.f32 %v1403_v54, %v1745_v58  ;;  %v1405_v60 = vpop.eup %1404 }
 0x414   : > { %v975_v62 = vmul.f32 %v1405_v60, %v1753_v10 }
 0x416   : > { %990 = vxpose.xlu0.b32.cont [7/16] (narrow) %v965_v46, 8 }
 0x418   : > { %v1407_v59 = vpop.eup %1406 }
 0x419   : > { %v977_v1 = vmul.f32 %v1407_v59, %v1763_v15  ;;  %v1409_v2 = vpop.eup %1408 }
 0x41a   : > { %991 = vxpose.xlu0.b32.cont [8/16] (narrow) %v967_v51, 8  ;;  %v979_v0 = vmul.f32 %v1409_v2, %v1759_v13  ;;  %v1411_v3 = vpop.eup %1410 }
 0x41b   : > { %v981_v4 = vmul.f32 %v1411_v3, %v1761_v14  ;;  %v1413_v5 = vpop.eup %1412 }
 0x41c   : > { %v983_v6 = vmul.f32 %v1413_v5, %v1769_v18 }
 0x41e   : > { %992 = vxpose.xlu0.b32.cont [9/16] (narrow) %v969_v55, 8 }
 0x422   : > { %993 = vxpose.xlu0.b32.cont [10/16] (narrow) %v971_v53, 8 }
 0x426   : > { %994 = vxpose.xlu0.b32.cont [11/16] (narrow) %v973_v57, 8 }
 0x42a   : > { %995 = vxpose.xlu0.b32.cont [12/16] (narrow) %v975_v62, 8 }
 0x42e   : > { %996 = vxpose.xlu0.b32.cont [13/16] (narrow) %v977_v1, 8 }
 0x432   : > { %997 = vxpose.xlu0.b32.cont [14/16] (narrow) %v979_v0, 8 }
 0x436   : > { %998 = vxpose.xlu0.b32.cont [15/16] (narrow) %v981_v4, 8 }
 0x43a   : > { %999 = vxpose.xlu0.b32.end [16/16] (narrow) %v983_v6, 8 }
 0x47e   : > { %v1000_v7 = vpop.trf.xlu0 }
 0x47f   : > { %1016 = vst [vmem:[%s272_s16] sm:$0x1f] %v1000_v7 }
 0x480   : > { %1427 = shalt.err (!%p1424_p3)
}
 0x481   : > { %s1428_s9 = scalar_lea.hbm %s1798_s21, 128  ;;  %s1432_s15 = scalar_lea.hbm %s1845_s7, 256 }
 0x482   : > { %p1429_p4 = scmp.ne.s32.totalorder %s1798_s21, %s1428_s9  ;;  %p1433_p9 = scmp.lt.u32.totalorder %s1798_s21, %s1845_s7 }
 0x483   : > { %p1434_p10 = scmp.lt.u32.totalorder %s1432_s15, %s1428_s9  ;;  %p1436_p12 = scmp.lt.u32.totalorder %s1428_s9, %s1798_s21 }
 0x484   : > { %p1430_p7 = pnand %p1429_p4, %p1557_p5 }
 0x485   : > { %p1435_p11 = por %p1434_p10, %p1433_p9 }
 0x486   : > { %p1431_p8 = pneg %p1430_p7 }
 0x487   : > { %p1437_p13 = por %p1436_p12, %p1435_p11 }
 0x489   : > { %p1438_p0 = pnand %p1437_p13, %p1431_p8 }
 0x48b   : > { %1441 = shalt.err (!%p1438_p0)
}
 0x48c   : > { %1239 = dma.vmem_to_hbm [thread:$0]  (%p1557_p5), %s1793_s17, 128, %s1798_s21, %s1018_s22  }
 0x48d PF: > { %p1245_p1 = scmp.ge.s32.totalorder %s1476_s27, 2  ;;  %s1043_s19 = sand.u32 1, %s1464_s24  }
 0x48e   : > { %s1044_s20 = scalar_lea.sflag [#allocation3], %s1043_s19 }
 0x48f   : > { %p1242_p2 = pnand %p1245_p1, %p1561_p6 }
 0x491   : > { %1459 = dma.done.wait (!%p1242_p2), %s1044_s20, 128  }
 0x492   : > { %1461 = vsyncadd (!%p1242_p2), %s1044_s20, 4294967168  ;;  %p17_p3 = scmp.ge.s32.totalorder %s1544_s30, 4   ;;  %s1848_s24 = smov %s1468_s25 }
 0x493   : > { %s1849_s25 = smov %s1472_s26  ;;  %s1850_s26 = smov %s1555_s10 }
 0x494   : > { %s1851_s27 = smov %s1544_s30  ;;  %19 = sbr.rel (!%p17_p3) target bundleno = 3 (0x3), region = 83 }
 0x49b   :  { %1049 = vsyncpa [#allocation3], 1 }
 0x49c   :  { %1051 = vsyncpa [#allocation3 + $0x1], 1 }

</bundles_post_ra>
